<compile_context>
chip_gen: v5e
topology: v5e:2x2
jax: 0.10.0
libtpu: 0.0.40
codegen_flags: <defaults>
</compile_context>

<pallas_src>
import functools

import jax
import jax.numpy as jnp
from jax.experimental import pallas as pl
from jax.experimental.pallas import tpu as pltpu

_EPS = 1e-5


# ------------------------------ sizing helpers --------------------------------
def _vmem_budget():
    """(vmem_limit_bytes, target_block_bytes), sized per TPU generation."""
    cap = 64 * 1024 * 1024  # conservative fallback = v7x
    try:
        info = pltpu.get_tpu_info()
        cap = int(getattr(info, "vmem_capacity_bytes", cap))
    except Exception:
        pass
    limit = min((cap * 3) // 4, 96 * 1024 * 1024)   # 48 MiB on v7x, 96 MiB on v5e/v6e
    target = limit // 8                              # 2 in + 2 out bufs + temps headroom
    return limit, target


def _pick_packing(C, L):
    """Channels packed per lane row (G) so block last dim R = G*L is lane-dense."""
    if L % 128 == 0:
        return 1
    best_g, best_util = 1, L / (-(-L // 128) * 128)
    g = 2
    while g <= C and g * L <= 1024:
        if C % g == 0:
            R = g * L
            util = R / (-(-R // 128) * 128)
            if R % 128 == 0:
                return g                 # smallest fully lane-dense packing
            if util > best_util + 1e-9:
                best_g, best_util = g, util
        g += 1
    return best_g


def _divisors_desc(n):
    return [d for d in range(n, 0, -1) if n % d == 0]


def _pick_channel_tile(CP, row_bytes, target_bytes, min_blocks=1):
    """Largest TCP | CP with (TCP % 8 == 0 or TCP == CP) and TCP*row_bytes <= target.
    If min_blocks > 1, prefer a tile giving >= min_blocks grid steps (v7x megacore)."""
    legal = [d for d in _divisors_desc(CP) if d % 8 == 0 or d == CP]
    fitting = [d for d in legal if d * row_bytes <= target_bytes]
    if min_blocks > 1:
        split = [d for d in fitting if CP // d >= min_blocks]
        if split:
            return split[0]
    if fitting:
        return fitting[0]
    # Nothing fits the soft target: smallest legal tile (still correct; the
    # vmem limit provides headroom).
    # TODO(synk): fall back to an accumulating multi-pass kernel if even the
    # smallest legal channel tile overflows VMEM (not reachable at DCGAN sizes).
    return legal[-1]


def _pick_batch_tile(N, slab_bytes, target_bytes):
    for d in _divisors_desc(N):
        if d * slab_bytes <= target_bytes:
            return d
    return 1


def _segment_matrix(R, G, L):
    """(R, G) 0/1 matrix: S[r, g] = 1 iff lane r belongs to packed channel g."""
    return (jnp.arange(R)[:, None] // L == jnp.arange(G)[None, :]).astype(jnp.float32)


# ----------------------------- GroupNorm(C, C) -------------------------------
def _group_norm_kernel(*refs, eps, inv_l, G):
    if G > 1:
        x_ref, g_ref, b_ref, s_ref, o_ref = refs
    else:
        x_ref, g_ref, b_ref, o_ref = refs

    if G == 1:
        # Unpacked path (L already lane-dense): fully vectorized over (NB, TCP, L).
        x = x_ref[...].astype(jnp.float32)                    # (NB, TCP, L)
        s = jnp.sum(x, axis=-1, keepdims=True)
        ss = jnp.sum(x * x, axis=-1, keepdims=True)
        mean = s * inv_l
        var = jnp.maximum(ss * inv_l - mean * mean, 0.0)
        a = g_ref[...][None] * jax.lax.rsqrt(var + eps)       # (NB, TCP, 1)
        c = b_ref[...][None] - mean * a
        o_ref[...] = (x * a + c).astype(o_ref.dtype)
    else:
        # Packed path: each lane row holds G channels of length L; per-channel
        # segmented sums / broadcasts via a 0/1 segment matrix on the MXU.
        seg = s_ref[...]                                      # (R, G)
        gam = g_ref[...]                                      # (TCP, G)
        bet = b_ref[...]
        nb = x_ref.shape[0]

        def body(i, carry):
            x = x_ref[i].astype(jnp.float32)                  # (TCP, R)
            s = jnp.einsum('cr,rg->cg', x, seg,
                           preferred_element_type=jnp.float32)
            ss = jnp.einsum('cr,rg->cg', x * x, seg,
                            preferred_element_type=jnp.float32)
            mean = s * inv_l
            var = jnp.maximum(ss * inv_l - mean * mean, 0.0)
            a = gam * jax.lax.rsqrt(var + eps)                # (TCP, G)
            c = bet - mean * a
            a_row = jnp.einsum('cg,rg->cr', a, seg,
                               preferred_element_type=jnp.float32)
            c_row = jnp.einsum('cg,rg->cr', c, seg,
                               preferred_element_type=jnp.float32)
            o_ref[i] = (x * a_row + c_row).astype(o_ref.dtype)
            return carry

        jax.lax.fori_loop(0, nb, body, 0)


def _group_norm(x4, gamma, beta, eps=_EPS):
    N, C, H, W = x4.shape
    L = H * W
    G = _pick_packing(C, L)
    CP, R = C // G, G * L
    x3 = x4.reshape(N, CP, R)                                 # free reshape (trailing dims)
    g2 = gamma.reshape(CP, G).astype(jnp.float32)
    b2 = beta.reshape(CP, G).astype(jnp.float32)

    vmem_limit, target = _vmem_budget()
    itemsize = x3.dtype.itemsize
    slab = CP * R * itemsize                                  # one sample's bytes
    if slab <= target:
        TCP, NB = CP, _pick_batch_tile(N, slab, target)
    else:
        TCP, NB = _pick_channel_tile(CP, R * itemsize, target), 1

    in_specs = [
        pl.BlockSpec((NB, TCP, R), lambda n, c: (n, c, 0)),
        pl.BlockSpec((TCP, G), lambda n, c: (c, 0)),
        pl.BlockSpec((TCP, G), lambda n, c: (c, 0)),
    ]
    args = [x3, g2, b2]
    if G > 1:
        in_specs.append(pl.BlockSpec((R, G), lambda n, c: (0, 0)))
        args.append(_segment_matrix(R, G, L))

    y3 = pl.pallas_call(
        functools.partial(_group_norm_kernel, eps=eps, inv_l=1.0 / float(L), G=G),
        out_shape=jax.ShapeDtypeStruct((N, CP, R), x3.dtype),
        grid_spec=pltpu.PrefetchScalarGridSpec(
            num_scalar_prefetch=0,
            grid=(N // NB, CP // TCP),
            in_specs=in_specs,
            out_specs=pl.BlockSpec((NB, TCP, R), lambda n, c: (n, c, 0)),
        ),
        compiler_params=pltpu.CompilerParams(
            dimension_semantics=("parallel", "parallel"),
            vmem_limit_bytes=vmem_limit,
        ),
        cost_estimate=pl.CostEstimate(
            flops=10 * x3.size,
            transcendentals=N * C,
            bytes_accessed=2 * x3.size * itemsize + 2 * C * 4,
        ),
    )(*args)
    return y3.reshape(N, C, H, W)


# ------------------------- BatchNorm2d (training mode) -----------------------
def _batch_norm_kernel(*refs, eps, inv_count, G):
    if G > 1:
        x_ref, g_ref, b_ref, s_ref, o_ref = refs
    else:
        x_ref, g_ref, b_ref, o_ref = refs

    x = x_ref[...].astype(jnp.float32)                        # (N, TCP, R)
    xs = jnp.sum(x, axis=0)                                   # (TCP, R)
    xss = jnp.sum(x * x, axis=0)
    if G > 1:
        seg = s_ref[...]                                      # (R, G)
        s = jnp.einsum('cr,rg->cg', xs, seg, preferred_element_type=jnp.float32)
        ss = jnp.einsum('cr,rg->cg', xss, seg, preferred_element_type=jnp.float32)
    else:
        s = jnp.sum(xs, axis=-1, keepdims=True)               # (TCP, 1)
        ss = jnp.sum(xss, axis=-1, keepdims=True)
    mean = s * inv_count
    # E[x^2] - E[x]^2 can go slightly negative in f32 -> clamp before rsqrt.
    var = jnp.maximum(ss * inv_count - mean * mean, 0.0)
    a = g_ref[...] * jax.lax.rsqrt(var + eps)                 # (TCP, G) or (TCP, 1)
    c = b_ref[...] - mean * a
    if G > 1:
        a = jnp.einsum('cg,rg->cr', a, seg, preferred_element_type=jnp.float32)
        c = jnp.einsum('cg,rg->cr', c, seg, preferred_element_type=jnp.float32)
    o_ref[...] = (x * a[None] + c[None]).astype(o_ref.dtype)


def _batch_norm(x4, gamma, beta, eps=_EPS):
    # TODO(synk): running_mean/running_var buffer updates of nn.BatchNorm2d are
    # not produced; only the training-mode forward output (batch statistics).
    N, C, H, W = x4.shape
    L = H * W
    G = _pick_packing(C, L)
    CP, R = C // G, G * L
    x3 = x4.reshape(N, CP, R)
    g2 = gamma.reshape(CP, G).astype(jnp.float32)
    b2 = beta.reshape(CP, G).astype(jnp.float32)

    vmem_limit, target = _vmem_budget()
    itemsize = x3.dtype.itemsize
    # Whole-batch channel slab per grid step; prefer >= 2 steps for v7x megacore.
    TCP = _pick_channel_tile(CP, N * R * itemsize, target, min_blocks=2)

    in_specs = [
        pl.BlockSpec((N, TCP, R), lambda c: (0, c, 0)),
        pl.BlockSpec((TCP, G), lambda c: (c, 0)),
        pl.BlockSpec((TCP, G), lambda c: (c, 0)),
    ]
    args = [x3, g2, b2]
    if G > 1:
        in_specs.append(pl.BlockSpec((R, G), lambda c: (0, 0)))
        args.append(_segment_matrix(R, G, L))

    y3 = pl.pallas_call(
        functools.partial(_batch_norm_kernel, eps=eps,
                          inv_count=1.0 / float(N * L), G=G),
        out_shape=jax.ShapeDtypeStruct((N, CP, R), x3.dtype),
        grid_spec=pltpu.PrefetchScalarGridSpec(
            num_scalar_prefetch=0,
            grid=(CP // TCP,),
            in_specs=in_specs,
            out_specs=pl.BlockSpec((N, TCP, R), lambda c: (0, c, 0)),
        ),
        compiler_params=pltpu.CompilerParams(
            dimension_semantics=("parallel",),
            vmem_limit_bytes=vmem_limit,
        ),
        cost_estimate=pl.CostEstimate(
            flops=10 * x3.size,
            transcendentals=C,
            bytes_accessed=2 * x3.size * itemsize + 2 * C * 4,
        ),
    )(*args)
    return y3.reshape(N, C, H, W)


# --------------------------------- wrapper -----------------------------------
def norm_layer_forward(x, norm_type, weight=None, bias=None):
    """Forward of `norm_layer`. x: (N, C, H, W); weight/bias: (C,)."""
    if norm_type is None or norm_type == "None":
        return x
    N, C, H, W = x.shape
    if weight is None:
        weight = jnp.ones((C,), jnp.float32)
    if bias is None:
        bias = jnp.zeros((C,), jnp.float32)
    if norm_type == "GroupNorm":
        return _group_norm(x, weight, bias)
    if norm_type == "BatchNorm2d":
        return _batch_norm(x, weight, bias)
    raise ValueError(f"Unknown normalization type: {norm_type}")


# ---------------------------- reference (pure JAX) ----------------------------
def _ref(x, norm_type, weight, bias, eps=_EPS):
    N, C, H, W = x.shape
    if norm_type is None or norm_type == "None":
        return x
    if norm_type == "GroupNorm":
        mean = x.mean(axis=(2, 3), keepdims=True)
        var = x.var(axis=(2, 3), keepdims=True)
        xhat = (x - mean) / jnp.sqrt(var + eps)
        return xhat * weight.reshape(1, C, 1, 1) + bias.reshape(1, C, 1, 1)
    if norm_type == "BatchNorm2d":
        mean = x.mean(axis=(0, 2, 3), keepdims=True)
        var = x.var(axis=(0, 2, 3), keepdims=True)
        xhat = (x - mean) / jnp.sqrt(var + eps)
        return xhat * weight.reshape(1, C, 1, 1) + bias.reshape(1, C, 1, 1)
    raise ValueError(norm_type)


if __name__ == "__main__":
    key = jax.random.PRNGKey(0)
    ok = True
    # (2,4,16,16): L=256, unpacked path.  (2,8,4,4): L=16 -> packed (G=8, R=128).
    # (3,8,7,5): L=35 -> packed with non-128-multiple lane rows.
    for shape in ((2, 4, 16, 16), (2, 8, 4, 4), (3, 8, 7, 5)):
        N, C, H, W = shape
        kx, kw, kb = jax.random.split(jax.random.fold_in(key, N * C * H * W), 3)
        x = jax.random.normal(kx, shape, dtype=jnp.float32)
        weight = 1.0 + 0.1 * jax.random.normal(kw, (C,), dtype=jnp.float32)
        bias = 0.1 * jax.random.normal(kb, (C,), dtype=jnp.float32)

        for norm_type in ("None", "GroupNorm", "BatchNorm2d"):
            y = norm_layer_forward(x, norm_type, weight, bias)
            jax.block_until_ready(y)
            y_ref = _ref(x, norm_type, weight, bias)
            if not jnp.allclose(y, y_ref, atol=1e-4, rtol=1e-4):
                ok = False
                print(f"MISMATCH for {norm_type} at shape {shape}: "
                      f"max err {float(jnp.max(jnp.abs(y - y_ref)))}")

    if ok:
        print("KERNEL_OK")
</pallas_src>

<mosaic_0001>
module attributes {stable_mosaic.version = 11 : i64} {
  func.func @_group_norm_kernel(%arg0: i32, %arg1: i32, %arg2: memref<2x4x256xf32, #tpu.memory_space<vmem>>, %arg3: memref<4x1xf32, #tpu.memory_space<vmem>>, %arg4: memref<4x1xf32, #tpu.memory_space<vmem>>, %arg5: memref<2x4x256xf32, #tpu.memory_space<vmem>>) attributes {dimension_semantics = [#tpu.dimension_semantics<parallel>, #tpu.dimension_semantics<parallel>], iteration_bounds = array<i64: 1, 1>, scalar_prefetch = 0 : i64, scratch_operands = 0 : i64, tpu.core_type = #tpu.core_type<tc>, window_params = [{transform_indices = @transform_0, window_bounds = array<i64: 2, 4, 256>}, {transform_indices = @transform_1, window_bounds = array<i64: 4, 1>}, {transform_indices = @transform_2, window_bounds = array<i64: 4, 1>}, {transform_indices = @transform_3, window_bounds = array<i64: 2, 4, 256>}]} {
    %c0 = arith.constant 0 : index
    %c0_0 = arith.constant 0 : index
    %c0_1 = arith.constant 0 : index
    %0 = vector.load %arg2[%c0, %c0_0, %c0_1] : memref<2x4x256xf32, #tpu.memory_space<vmem>>, vector<2x4x256xf32>
    %cst = arith.constant dense<0.000000e+00> : vector<2x4xf32>
    %1 = vector.multi_reduction <add>, %0, %cst [2] : vector<2x4x256xf32> to vector<2x4xf32>
    %2 = vector.shape_cast %1 : vector<2x4xf32> to vector<2x4x1xf32>
    %3 = arith.mulf %0, %0 : vector<2x4x256xf32>
    %cst_2 = arith.constant dense<0.000000e+00> : vector<2x4xf32>
    %4 = vector.multi_reduction <add>, %3, %cst_2 [2] : vector<2x4x256xf32> to vector<2x4xf32>
    %5 = vector.shape_cast %4 : vector<2x4xf32> to vector<2x4x1xf32>
    %cst_3 = arith.constant 3.906250e-03 : f32
    %6 = vector.broadcast %cst_3 : f32 to vector<2x4x1xf32>
    %7 = arith.mulf %2, %6 : vector<2x4x1xf32>
    %cst_4 = arith.constant 3.906250e-03 : f32
    %8 = vector.broadcast %cst_4 : f32 to vector<2x4x1xf32>
    %9 = arith.mulf %5, %8 : vector<2x4x1xf32>
    %10 = arith.mulf %7, %7 : vector<2x4x1xf32>
    %11 = arith.subf %9, %10 : vector<2x4x1xf32>
    %cst_5 = arith.constant 0.000000e+00 : f32
    %12 = vector.broadcast %cst_5 : f32 to vector<2x4x1xf32>
    %13 = arith.maximumf %11, %12 : vector<2x4x1xf32>
    %c0_6 = arith.constant 0 : index
    %c0_7 = arith.constant 0 : index
    %14 = vector.load %arg3[%c0_6, %c0_7] : memref<4x1xf32, #tpu.memory_space<vmem>>, vector<4x1xf32>
    %15 = vector.shape_cast %14 : vector<4x1xf32> to vector<1x4x1xf32>
    %cst_8 = arith.constant 9.99999974E-6 : f32
    %16 = vector.broadcast %cst_8 : f32 to vector<2x4x1xf32>
    %17 = arith.addf %13, %16 : vector<2x4x1xf32>
    %18 = math.rsqrt %17 : vector<2x4x1xf32>
    %19 = vector.broadcast %15 : vector<1x4x1xf32> to vector<2x4x1xf32>
    %20 = arith.mulf %19, %18 : vector<2x4x1xf32>
    %c0_9 = arith.constant 0 : index
    %c0_10 = arith.constant 0 : index
    %21 = vector.load %arg4[%c0_9, %c0_10] : memref<4x1xf32, #tpu.memory_space<vmem>>, vector<4x1xf32>
    %22 = vector.shape_cast %21 : vector<4x1xf32> to vector<1x4x1xf32>
    %23 = arith.mulf %7, %20 : vector<2x4x1xf32>
    %24 = vector.broadcast %22 : vector<1x4x1xf32> to vector<2x4x1xf32>
    %25 = arith.subf %24, %23 : vector<2x4x1xf32>
    %26 = vector.broadcast %20 : vector<2x4x1xf32> to vector<2x4x256xf32>
    %27 = arith.mulf %0, %26 : vector<2x4x256xf32>
    %28 = vector.broadcast %25 : vector<2x4x1xf32> to vector<2x4x256xf32>
    %29 = arith.addf %27, %28 : vector<2x4x256xf32>
    %c0_11 = arith.constant 0 : index
    %c0_12 = arith.constant 0 : index
    %c0_13 = arith.constant 0 : index
    %30 = vector.load %arg5[%c0_11, %c0_12, %c0_13] : memref<2x4x256xf32, #tpu.memory_space<vmem>>, vector<2x4x256xf32>
    tpu.vector_store %arg5[%c0_11, %c0_12, %c0_13], %29 {strides = array<i32>} : memref<2x4x256xf32, #tpu.memory_space<vmem>>, vector<2x4x256xf32>,
    return
  }
  func.func @transform_0(%arg0: i32, %arg1: i32) -> (i32, i32, i32) {
    %c0_i32 = arith.constant 0 : i32
    %c0_i32_0 = arith.constant 0 : i32
    return %arg0, %arg1, %c0_i32 : i32, i32, i32
  }
  func.func @transform_1(%arg0: i32, %arg1: i32) -> (i32, i32) {
    %c0_i32 = arith.constant 0 : i32
    %c0_i32_0 = arith.constant 0 : i32
    return %arg1, %c0_i32 : i32, i32
  }
  func.func @transform_2(%arg0: i32, %arg1: i32) -> (i32, i32) {
    %c0_i32 = arith.constant 0 : i32
    %c0_i32_0 = arith.constant 0 : i32
    return %arg1, %c0_i32 : i32, i32
  }
  func.func @transform_3(%arg0: i32, %arg1: i32) -> (i32, i32, i32) {
    %c0_i32 = arith.constant 0 : i32
    %c0_i32_0 = arith.constant 0 : i32
    return %arg0, %arg1, %c0_i32 : i32, i32, i32
  }
}

</mosaic_0001>

<bundles_post_ra>
// kernel: tpu_custom_call.1
= control target key start
LH: loop header
LB: loop body
LE: loop exit
PB: predicated region body
PF: predicated region fallthrough
CT: control target
= control target key end

     0   :  { %8 = vsyncpa [#allocation3], 0  ;;  %s312_s0 = inlined_call_operand.hbm [shape: f32[2,4,256], index: 0, kind: input, shape index: {}]   ;;  %s313_s1 = inlined_call_operand.vmem [shape: f32[4,1], index: 1, kind: input, shape index: {}]   ;;  %s314_s2 = inlined_call_operand.vmem [shape: f32[4,1], index: 2, kind: input, shape index: {}]   ;;  %s315_s3 = inlined_call_operand.hbm [shape: f32[2,4,256], index: 3, kind: output, shape index: {}]  }
   0x1   :  { %9 = vsyncpa [#allocation4], 0  ;;  %s14_s14 = sshll.u32 %s312_s0, 4  ;;  %s248_s15 = smov [#allocation2]   ;;  %s15_s14 = int_to_ptr.hbm [resolvable:$true] %s14_s14 }
   0x2   :  { %s16_s16 = sshll.u32 %s248_s15, 4  ;;  %s249_s17 = smov 128   ;;  %s17_s16 = int_to_ptr.vmem [resolvable:$true] %s16_s16 }
   0x3   :  { %s250_s18 = smov 8  }
   0x4   :  { %22 = dma.hbm_to_vmem [thread:$0]  %s15_s14, 256, %s17_s16, [#allocation3], %s249_s17, %s249_s17, %s250_s18  }
   0x5   :  { %244 = dma.done.wait [#allocation3], 256  }
   0x6   :  { %245 = vsyncadd [#allocation3], 4294967040  ;;  %v280_v0 = vld [vmem:[#allocation2] sm:$0xff]  ;;  %v282_v1 = vld [vmem:[#allocation2 + $0x8] sm:$0xff]  ;;  %vm46_vm0 = vcmask 1043456   ;;  %v251_v26 = vmov 0  }
   0x7   :  { %35 = vst [vmem:[#allocation1] ss:$2 sm:$0xff] %v280_v0  ;;  %v57_v2 = vmul.f32 %v280_v0, %v280_v0  ;;  %v58_v3 = vmul.f32 %v282_v1, %v282_v1  ;;  %189 = vset.pattern.permute.xlu2 %v251_v26  ;;  %190 = vset.pattern.permute.xlu0 %v251_v26  ;;  %v92_v48 = vld [vmem:[%s313_s1] sm:$0xf]  ;;  %v252_v63 = vmov 839922192  }
   0x8   :  { %39 = vst [vmem:[#allocation1 + $0x10] ss:$2 sm:$0xff] %v282_v1  ;;  %191 = vset.pattern.permute.xlu1 %v251_v26  ;;  %v117_v54 = vld [vmem:[%s314_s2] sm:$0xf]  ;;  %s253_s1 = smov [#allocation5]   ;;  %s170_s24 = sshll.u32 %s315_s3, 4  ;;  %s171_s24 = int_to_ptr.hbm [resolvable:$true] %s170_s24 }
   0x9   :  { %s168_s2 = sshll.u32 %s253_s1, 4  ;;  %s169_s2 = int_to_ptr.vmem [resolvable:$true] %s168_s2 }
   0xe   :  { %v36_v4 = vld.sshfl [vmem:[#allocation1] sm:$0xff pattern:$0x75316420]  ;;  %v37_v5 = vld.sshfl [vmem:[#allocation1 + $0x8] sm:$0xff pattern:$0x75316420] }
   0xf   :  { %v47_v6 = vsel %vm46_vm0, %v36_v4, 0.0  ;;  %v48_v7 = vsel %vm46_vm0, %v37_v5, 0.0  ;;  %61 = vst [vmem:[#allocation1] ss:$2 sm:$0xff] %v57_v2  ;;  %v131_v2 = vunpack.c.l.s4 %v252_v63 }
  0x10   :  { %v49_v8 = vadd.f32 %v48_v7, %v47_v6  ;;  %v40_v9 = vld.sshfl [vmem:[#allocation1 + $0x10] sm:$0xff pattern:$0x75316420]  ;;  %v41_v10 = vld.sshfl [vmem:[#allocation1 + $0x18] sm:$0xff pattern:$0x75316420] }
  0x11   :  { %65 = vst [vmem:[#allocation1 + $0x10] ss:$2 sm:$0xff] %v58_v3  ;;  %v52_v11 = vsel %vm46_vm0, %v40_v9, 0.0  ;;  %v53_v12 = vsel %vm46_vm0, %v41_v10, 0.0  ;;  %v132_v4 = vunpack.c.0.s8 %v131_v2 }
  0x12   :  { %50 = vadd.xlane.f32.xlu0 %v49_v8  ;;  %v54_v15 = vadd.f32 %v53_v12, %v52_v11 }
  0x16   :  { %v62_v13 = vld.sshfl [vmem:[#allocation1] sm:$0xff pattern:$0x75316420]  ;;  %v63_v14 = vld.sshfl [vmem:[#allocation1 + $0x8] sm:$0xff pattern:$0x75316420] }
  0x17   :  { %v72_v16 = vsel %vm46_vm0, %v62_v13, 0.0  ;;  %v73_v17 = vsel %vm46_vm0, %v63_v14, 0.0 }
  0x18   :  { %v74_v18 = vadd.f32 %v73_v17, %v72_v16  ;;  %v66_v19 = vld.sshfl [vmem:[#allocation1 + $0x10] sm:$0xff pattern:$0x75316420]  ;;  %v67_v20 = vld.sshfl [vmem:[#allocation1 + $0x18] sm:$0xff pattern:$0x75316420] }
  0x19   :  { %v77_v21 = vsel %vm46_vm0, %v66_v19, 0.0  ;;  %v78_v22 = vsel %vm46_vm0, %v67_v20, 0.0 }
  0x1a   :  { %75 = vadd.xlane.f32.xlu1 %v74_v18  ;;  %55 = vadd.xlane.f32.xlu0 %v54_v15  ;;  %v79_v23 = vadd.f32 %v78_v22, %v77_v21 }
  0x22   :  { %80 = vadd.xlane.f32.xlu1 %v79_v23 }
  0x85   :  { %v51_v24 = vpop.xlane.xlu0 %50 }
  0x86   :  { %v82_v25 = vmul.f32 0.00390625, %v51_v24 }
  0x88   :  { %v86_v27 = vmul.f32 %v82_v25, %v82_v25 }
  0x8d   :  { %v76_v28 = vpop.xlane.xlu1 %75  ;;  %v56_v29 = vpop.xlane.xlu0 %55 }
  0x8e   :  { %v84_v30 = vmul.f32 0.00390625, %v76_v28  ;;  %v83_v32 = vmul.f32 0.00390625, %v56_v29 }
  0x90   :  { %v88_v31 = vsub.f32 %v84_v30, %v86_v27  ;;  %v87_v35 = vmul.f32 %v83_v32, %v83_v32 }
  0x92   :  { %v90_v33 = vmax.f32 %v88_v31, 0.0 }
  0x94   :  { %v93_v34 = vadd.f32 1e-05, %v90_v33 }
  0x95   :  { %v81_v36 = vpop.xlane.xlu1 %80 }
  0x96   :  { %192 = vrsqrt.f32 %v93_v34  ;;  %v85_v37 = vmul.f32 0.00390625, %v81_v36  ;;  %vm101_vm2 = vweird.f32 %v93_v34 }
  0x98   :  { %v89_v38 = vsub.f32 %v85_v37, %v87_v35 }
  0x9a   :  { %v91_v39 = vmax.f32 %v89_v38, 0.0 }
  0x9c   :  { %v193_v40 = vpop.eup %192  ;;  %v94_v41 = vadd.f32 1e-05, %v91_v39 }
  0x9d   :  { %v96_v42 = vmul.f32 %v193_v40, %v93_v34  ;;  %vm102_vm1 = vweird.f32 %v193_v40 }
  0x9e   :  { %194 = vrsqrt.f32 %v94_v41  ;;  %vm103_vm3 = vmor %vm101_vm2, %vm102_vm1  ;;  %vm111_vm5 = vweird.f32 %v94_v41 }
  0x9f   :  { %v97_v43 = vmul.f32 %v193_v40, %v96_v42 }
  0xa1   :  { %v98_v44 = vmul.f32 0.5, %v97_v43 }
  0xa3   :  { %v99_v45 = vsub.f32 1.5, %v98_v44 }
  0xa4   :  { %v195_v46 = vpop.eup %194 }
  0xa5   :  { %v106_v47 = vmul.f32 %v195_v46, %v94_v41  ;;  %v100_v49 = vmul.f32 %v193_v40, %v99_v45  ;;  %vm112_vm4 = vweird.f32 %v195_v46 }
  0xa6   :  { %vm113_vm6 = vmor %vm111_vm5, %vm112_vm4 }
  0xa7   :  { %v107_v50 = vmul.f32 %v195_v46, %v106_v47  ;;  %v104_v51 = vsel %vm103_vm3, %v193_v40, %v100_v49 }
  0xa8   :  { %v115_v52 = vmul.f32 %v104_v51, %v92_v48 }
  0xa9   :  { %v108_v53 = vmul.f32 0.5, %v107_v50 }
  0xaa   :  { %124 = vperm.xlu2 %189, %v115_v52   ;;  %v118_v55 = vmul.f32 %v115_v52, %v82_v25 }
  0xab   :  { %v109_v56 = vsub.f32 1.5, %v108_v53 }
  0xac   :  { %v120_v57 = vsub.f32 %v117_v54, %v118_v55 }
  0xad   :  { %v110_v58 = vmul.f32 %v195_v46, %v109_v56 }
  0xae   :  { %144 = vperm.xlu0 %190, %v120_v57  }
  0xaf   :  { %v114_v59 = vsel %vm113_vm6, %v195_v46, %v110_v58 }
  0xb0   :  { %v116_v60 = vmul.f32 %v114_v59, %v92_v48 }
  0xb2   :  { %v119_v61 = vmul.f32 %v116_v60, %v83_v32  ;;  %128 = vperm.xlu2 %189, %v116_v60  }
  0xb4   :  { %v121_v62 = vsub.f32 %v117_v54, %v119_v61 }
  0xb6   :  { %148 = vperm.xlu1 %191, %v121_v62  }
 0x104   :  { %v125_v3 = vpop.permute.xlu2 %124 }
 0x105   :  { %v133_v5 = vperm.slane %v125_v3, %v132_v4 }
 0x107   :  { %v140_v7 = vmul.f32 %v133_v5, %v280_v0 }
 0x10c   :  { %v129_v9 = vpop.permute.xlu2 %128 }
 0x10d   :  { %v137_v11 = vperm.slane %v129_v9, %v132_v4 }
 0x10f   :  { %v141_v13 = vmul.f32 %v137_v11, %v282_v1 }
 0x120   :  { %v145_v6 = vpop.permute.xlu0 %144 }
 0x121   :  { %v153_v8 = vperm.slane %v145_v6, %v132_v4 }
 0x123   :  { %v160_v10 = vadd.f32 %v153_v8, %v140_v7 }
 0x125   :  { %162 = vst [vmem:[#allocation5] sm:$0xff] %v160_v10 }
 0x128   :  { %v149_v12 = vpop.permute.xlu1 %148 }
 0x129   :  { %v157_v14 = vperm.slane %v149_v12, %v132_v4 }
 0x12b   :  { %v161_v15 = vadd.f32 %v157_v14, %v141_v13 }
 0x12d   :  { %163 = vst [vmem:[#allocation5 + $0x8] sm:$0xff] %v161_v15 }
 0x12e   :  { %176 = dma.vmem_to_hbm [thread:$0]  %s169_s2, 256, %s171_s24, [#allocation4], %s249_s17, %s249_s17, %s250_s18  }
 0x12f   :  { %246 = dma.done.wait [#allocation4], 256  }
 0x130   :  { %247 = vsyncadd [#allocation4], 4294967040 }
 0x131   :  { %181 = vsyncpa [#allocation3], 1 }
 0x132   :  { %182 = vsyncpa [#allocation4], 1 }

</bundles_post_ra>
